<compile_context>
chip_gen: v7x
topology: tpu7x:2x2x1
jax: 0.10.0
libtpu: 0.0.40
codegen_flags: <defaults>
</compile_context>

<pallas_src>
import jax
import jax.numpy as jnp
from jax.experimental import pallas as pl
from jax.experimental.pallas import tpu as pltpu


# Packed-parameter row slots (8-aligned so in-kernel slices are cheap).
_W1_ROW, _W2_ROW, _W3_ROW, _W4_ROW = 0, 16, 24, 40
_P_ROWS, _P_COLS = 72, 32
_BIAS_COL = 31


def autoencoder_kernel(p_ref, x_ref, o_ref):
    """One batch tile, feature-major: x_ref (30, tb) -> o_ref (30, tb)."""
    x = x_ref[...]  # (30, tb) f32

    # Static slices of the packed parameter block (resident in VMEM).
    w1 = p_ref[_W1_ROW:_W1_ROW + 15, 0:30]
    b1 = p_ref[_W1_ROW:_W1_ROW + 15, _BIAS_COL:_BIAS_COL + 1]
    w2 = p_ref[_W2_ROW:_W2_ROW + 6, 0:15]
    b2 = p_ref[_W2_ROW:_W2_ROW + 6, _BIAS_COL:_BIAS_COL + 1]
    w3 = p_ref[_W3_ROW:_W3_ROW + 15, 0:6]
    b3 = p_ref[_W3_ROW:_W3_ROW + 15, _BIAS_COL:_BIAS_COL + 1]
    w4 = p_ref[_W4_ROW:_W4_ROW + 30, 0:15]
    b4 = p_ref[_W4_ROW:_W4_ROW + 30, _BIAS_COL:_BIAS_COL + 1]

    # encoder
    h1 = jnp.maximum(
        jnp.dot(w1, x, preferred_element_type=jnp.float32) + b1, 0.0)
    z = jnp.dot(w2, h1, preferred_element_type=jnp.float32) + b2
    # decoder
    h2 = jnp.maximum(
        jnp.dot(w3, z, preferred_element_type=jnp.float32) + b3, 0.0)
    y = jnp.dot(w4, h2, preferred_element_type=jnp.float32) + b4

    o_ref[...] = y.astype(o_ref.dtype)


def _pick_batch_tile(B, target=2048, min_tiles=2):
    """Largest 128-aligned tile <= target dividing B, preferring >= min_tiles tiles."""
    if B % 128 != 0:
        return B  # single full block (legal: block == full array dims)
    cap = min(target, B // min_tiles) if B >= min_tiles * 128 else min(target, B)
    cap -= cap % 128
    tb = max(cap, 128)
    while tb >= 128:
        if B % tb == 0:
            return tb
        tb -= 128
    return B


def autoencoder_forward(x, packed_params, *, tb=None):
    """x: (B, 30) float32.  packed_params: (72, 32) float32 from pack_params()."""
    B, D_in = x.shape
    assert D_in == 30

    # Feature-major view for the kernel (batch on lanes).  In production the
    # caller would keep data in this layout; here the transpose is plain XLA.
    x_fm = jnp.transpose(x)  # (30, B)

    if tb is None:
        tb = _pick_batch_tile(B)
    assert B % tb == 0 and (tb % 128 == 0 or tb == B)

    flops = 2 * B * (30 * 15 + 15 * 6 + 6 * 15 + 15 * 30)
    bytes_accessed = B * 30 * 4 * 2 + _P_ROWS * _P_COLS * 4

    y_fm = pl.pallas_call(
        autoencoder_kernel,
        out_shape=jax.ShapeDtypeStruct((30, B), x.dtype),
        grid_spec=pltpu.PrefetchScalarGridSpec(
            num_scalar_prefetch=0,
            grid=(B // tb,),
            in_specs=[
                pl.BlockSpec((_P_ROWS, _P_COLS), lambda i: (0, 0)),  # packed params
                pl.BlockSpec((30, tb), lambda i: (0, i)),            # x tile
            ],
            out_specs=pl.BlockSpec((30, tb), lambda i: (0, i)),
        ),
        compiler_params=pltpu.CompilerParams(
            dimension_semantics=("parallel",),
        ),
        cost_estimate=pl.CostEstimate(
            flops=flops, transcendentals=0, bytes_accessed=bytes_accessed),
    )(packed_params, x_fm)

    return jnp.transpose(y_fm)  # back to (B, 30)


def init_params(key):
    """PyTorch-Linear-like init.  Weights stored (out, in), biases (out,)."""
    def linear(key, fan_in, fan_out):
        kw, kb = jax.random.split(key)
        bound = 1.0 / jnp.sqrt(fan_in)
        w = jax.random.uniform(kw, (fan_out, fan_in), jnp.float32, -bound, bound)
        b = jax.random.uniform(kb, (fan_out,), jnp.float32, -bound, bound)
        return w, b

    k1, k2, k3, k4 = jax.random.split(key, 4)
    w1, b1 = linear(k1, 30, 15)
    w2, b2 = linear(k2, 15, 6)
    w3, b3 = linear(k3, 6, 15)
    w4, b4 = linear(k4, 15, 30)
    return {"w1": w1, "b1": b1, "w2": w2, "b2": b2,
            "w3": w3, "b3": b3, "w4": w4, "b4": b4}


def pack_params(p):
    """Pack all weights/biases into one (72, 32) block; bias lives in col 31."""
    P = jnp.zeros((_P_ROWS, _P_COLS), jnp.float32)

    def put(P, row, w, b):
        o, i = w.shape
        P = P.at[row:row + o, 0:i].set(w)
        P = P.at[row:row + o, _BIAS_COL].set(b)
        return P

    P = put(P, _W1_ROW, p["w1"], p["b1"])
    P = put(P, _W2_ROW, p["w2"], p["b2"])
    P = put(P, _W3_ROW, p["w3"], p["b3"])
    P = put(P, _W4_ROW, p["w4"], p["b4"])
    return P


def reference_forward(x, p):
    """Pure-JAX reference of the PyTorch forward (row-major, W_torch layout)."""
    h1 = jnp.maximum(x @ p["w1"].T + p["b1"], 0.0)
    z = h1 @ p["w2"].T + p["b2"]
    h2 = jnp.maximum(z @ p["w3"].T + p["b3"], 0.0)
    return h2 @ p["w4"].T + p["b4"]


if __name__ == "__main__":
    key = jax.random.PRNGKey(0)
    kp, kx = jax.random.split(key)

    params = init_params(kp)
    packed = pack_params(params)

    B = 1024  # -> tb = 512, grid of 2 batch tiles (pipelined, megacore-friendly)
    x = jax.random.normal(kx, (B, 30), jnp.float32)

    out = autoencoder_forward(x, packed)
    out = jax.block_until_ready(out)

    ref = reference_forward(x, params)
    assert out.shape == (B, 30)
    assert jnp.allclose(out, ref, atol=2e-5, rtol=2e-5), "mismatch vs JAX reference"

    print("KERNEL_OK")
</pallas_src>

<mosaic_0001>
module attributes {stable_mosaic.version = 11 : i64} {
  func.func @autoencoder_kernel(%arg0: i32, %arg1: memref<72x32xf32, #tpu.memory_space<vmem>>, %arg2: memref<30x512xf32, #tpu.memory_space<vmem>>, %arg3: memref<30x512xf32, #tpu.memory_space<vmem>>) attributes {dimension_semantics = [#tpu.dimension_semantics<parallel>], iteration_bounds = array<i64: 2>, scalar_prefetch = 0 : i64, scratch_operands = 0 : i64, tpu.core_type = #tpu.core_type<tc>, window_params = [{pipeline_mode = #tpu.pipeline_mode<synchronous>, transform_indices = @transform_0, window_bounds = array<i64: 72, 32>}, {transform_indices = @transform_1, window_bounds = array<i64: 30, 512>}, {transform_indices = @transform_2, window_bounds = array<i64: 30, 512>}]} {
    %c0 = arith.constant 0 : index
    %c0_0 = arith.constant 0 : index
    %0 = vector.load %arg2[%c0, %c0_0] : memref<30x512xf32, #tpu.memory_space<vmem>>, vector<30x512xf32>
    %c0_1 = arith.constant 0 : index
    %c0_2 = arith.constant 0 : index
    %1 = vector.load %arg1[%c0_1, %c0_2] : memref<72x32xf32, #tpu.memory_space<vmem>>, vector<15x30xf32>
    %c0_3 = arith.constant 0 : index
    %c31 = arith.constant 31 : index
    %2 = vector.load %arg1[%c0_3, %c31] : memref<72x32xf32, #tpu.memory_space<vmem>>, vector<15x1xf32>
    %c16 = arith.constant 16 : index
    %c0_4 = arith.constant 0 : index
    %3 = vector.load %arg1[%c16, %c0_4] : memref<72x32xf32, #tpu.memory_space<vmem>>, vector<6x15xf32>
    %c16_5 = arith.constant 16 : index
    %c31_6 = arith.constant 31 : index
    %4 = vector.load %arg1[%c16_5, %c31_6] : memref<72x32xf32, #tpu.memory_space<vmem>>, vector<6x1xf32>
    %c24 = arith.constant 24 : index
    %c0_7 = arith.constant 0 : index
    %5 = vector.load %arg1[%c24, %c0_7] : memref<72x32xf32, #tpu.memory_space<vmem>>, vector<15x6xf32>
    %c24_8 = arith.constant 24 : index
    %c31_9 = arith.constant 31 : index
    %6 = vector.load %arg1[%c24_8, %c31_9] : memref<72x32xf32, #tpu.memory_space<vmem>>, vector<15x1xf32>
    %c40 = arith.constant 40 : index
    %c0_10 = arith.constant 0 : index
    %7 = vector.load %arg1[%c40, %c0_10] : memref<72x32xf32, #tpu.memory_space<vmem>>, vector<30x15xf32>
    %c40_11 = arith.constant 40 : index
    %c31_12 = arith.constant 31 : index
    %8 = vector.load %arg1[%c40_11, %c31_12] : memref<72x32xf32, #tpu.memory_space<vmem>>, vector<30x1xf32>
    %cst = arith.constant dense<0.000000e+00> : vector<15x512xf32>
    %9 = tpu.matmul %1, %0, %cst {dimension_numbers = #tpu.dot_dimension_numbers<[1], [0], [0], [1], [0, 0, 1, 1], [], []>} : vector<15x30xf32>, vector<30x512xf32>, vector<15x512xf32> -> vector<15x512xf32>
    %10 = vector.broadcast %2 : vector<15x1xf32> to vector<15x512xf32>
    %11 = arith.addf %9, %10 : vector<15x512xf32>
    %cst_13 = arith.constant 0.000000e+00 : f32
    %12 = vector.broadcast %cst_13 : f32 to vector<15x512xf32>
    %13 = arith.maximumf %11, %12 : vector<15x512xf32>
    %cst_14 = arith.constant dense<0.000000e+00> : vector<6x512xf32>
    %14 = tpu.matmul %3, %13, %cst_14 {dimension_numbers = #tpu.dot_dimension_numbers<[1], [0], [0], [1], [0, 0, 1, 1], [], []>} : vector<6x15xf32>, vector<15x512xf32>, vector<6x512xf32> -> vector<6x512xf32>
    %15 = vector.broadcast %4 : vector<6x1xf32> to vector<6x512xf32>
    %16 = arith.addf %14, %15 : vector<6x512xf32>
    %cst_15 = arith.constant dense<0.000000e+00> : vector<15x512xf32>
    %17 = tpu.matmul %5, %16, %cst_15 {dimension_numbers = #tpu.dot_dimension_numbers<[1], [0], [0], [1], [0, 0, 1, 1], [], []>} : vector<15x6xf32>, vector<6x512xf32>, vector<15x512xf32> -> vector<15x512xf32>
    %18 = vector.broadcast %6 : vector<15x1xf32> to vector<15x512xf32>
    %19 = arith.addf %17, %18 : vector<15x512xf32>
    %cst_16 = arith.constant 0.000000e+00 : f32
    %20 = vector.broadcast %cst_16 : f32 to vector<15x512xf32>
    %21 = arith.maximumf %19, %20 : vector<15x512xf32>
    %cst_17 = arith.constant dense<0.000000e+00> : vector<30x512xf32>
    %22 = tpu.matmul %7, %21, %cst_17 {dimension_numbers = #tpu.dot_dimension_numbers<[1], [0], [0], [1], [0, 0, 1, 1], [], []>} : vector<30x15xf32>, vector<15x512xf32>, vector<30x512xf32> -> vector<30x512xf32>
    %23 = vector.broadcast %8 : vector<30x1xf32> to vector<30x512xf32>
    %24 = arith.addf %22, %23 : vector<30x512xf32>
    %c0_18 = arith.constant 0 : index
    %c0_19 = arith.constant 0 : index
    %25 = vector.load %arg3[%c0_18, %c0_19] : memref<30x512xf32, #tpu.memory_space<vmem>>, vector<30x512xf32>
    tpu.vector_store %arg3[%c0_18, %c0_19], %24 {strides = array<i32>} : memref<30x512xf32, #tpu.memory_space<vmem>>, vector<30x512xf32>,
    return
  }
  func.func @transform_0(%arg0: i32) -> (i32, i32) {
    %c0_i32 = arith.constant 0 : i32
    %c0_i32_0 = arith.constant 0 : i32
    %c0_i32_1 = arith.constant 0 : i32
    return %c0_i32, %c0_i32_0 : i32, i32
  }
  func.func @transform_1(%arg0: i32) -> (i32, i32) {
    %c0_i32 = arith.constant 0 : i32
    %c0_i32_0 = arith.constant 0 : i32
    return %c0_i32, %arg0 : i32, i32
  }
  func.func @transform_2(%arg0: i32) -> (i32, i32) {
    %c0_i32 = arith.constant 0 : i32
    %c0_i32_0 = arith.constant 0 : i32
    return %c0_i32, %arg0 : i32, i32
  }
}

</mosaic_0001>

<bundles_post_ra>
// kernel: tpu_custom_call.1
= control target key start
LH: loop header
LB: loop body
LE: loop exit
PB: predicated region body
PF: predicated region fallthrough
CT: control target
= control target key end

     0   :  { %7 = vsyncpa [#allocation3], 0  ;;  %s1651_s0 = inlined_call_operand.vmem [shape: f32[72,32], index: 0, kind: input, shape index: {}]   ;;  %s1652_s1 = inlined_call_operand.hbm [shape: f32[30,1024], index: 1, kind: input, shape index: {}]   ;;  %s1653_s2 = inlined_call_operand.hbm [shape: f32[30,1024], index: 2, kind: output, shape index: {}]  }
   0x1   :  { %9 = vsyncpa [#allocation3 + $0x1], 0 }
   0x2   :  { %10 = vsyncpa [#allocation4], 0 }
   0x3   :  { %12 = vsyncpa [#allocation4 + $0x1], 0  ;;  %s1327_s9 = smov 0   ;;  %s1329_s10 = smov 0  }
   0x4   :  { %s1331_s11 = smov 0   ;;  %s1333_s12 = smov 0  }
   0x5 LB: > { %s1348_s13 = sadd.s32 4294967295, %s1299_s12   ;;  %s1052_s14 = sadd.s32 4294967294, %s1299_s12   ;;  %s1299_s12 = sphi %s1333_s12, %s1671_s12   ;;  %s1295_s11 = sphi %s1331_s11, %s1670_s11   ;;  %s1291_s10 = sphi %s1329_s10, %s1669_s10   ;;  %s1287_s9 = sphi %s1327_s9, %s1668_s9  }
   0x6   : > { %s1352_s15 = sadd.s32 1, %s1299_s12   ;;  %s46_s16 = sadd.s32 1, %s1295_s11 }
   0x7   : > { %s43_s17 = ssub.s32 %s1299_s12, %s1352_s15  ;;  %p53_p0 = scmp.ne.s32.totalorder %s1295_s11, %s1291_s10 }
   0x8   : > { %p44_p1 = scmp.eq.s32.totalorder %s43_s17, 0  ;;  %p54_p2 = scmp.eq.s32.totalorder %s1299_s12, 0 }
   0x9   : > { %p59_p3 = scmp.ne.s32.totalorder %s1291_s10, %s1287_s9  ;;  %p60_p4 = scmp.eq.s32.totalorder %s1348_s13, 0 }
   0xa   : > { %s1364_s18 = scalar_select %p44_p1, %s1295_s11, %s46_s16  }
   0xb   : > { %p1366_p5 = por %p54_p2, %p53_p0  ;;  %p1370_p6 = por %p60_p4, %p59_p3 }
   0xc   : > { %p83_p7 = scmp.eq.s32.totalorder %s1348_s13, 1  ;;  %p89_p8 = scmp.eq.s32.totalorder %s1052_s14, 1 }
   0xd   : > { %p1158_p10 = scmp.lt.s32.totalorder %s1299_s12, 2  ;;  %s112_s23 = sand.u32 1, %s1295_s11  }
   0xe   : > { %p1377_p11 = por %p83_p7, %p53_p0  ;;  %p1381_p12 = por %p89_p8, %p59_p3 }
   0xf   : > { %s1100_s24 = sshll.u32 %s1299_s12, 9  ;;  %s1055_s25 = sshll.u32 %s112_s23, 7 }
  0x10   : > { %s1657_s21 = scalar_select %p1377_p11, 1, 0 }
  0x11   : > { %s1658_s22 = scalar_select %p1381_p12, 1, 0 }
  0x12   : > { %s1390_s28 = scalar_lea.hbm %s1652_s1, %s1100_s24  ;;  %s116_s29 = scalar_lea.vmem [#allocation2], %s1055_s25 }
  0x13   : > { %s123_s30 = sshll.u32 %s116_s29, 4  ;;  %p1394_p13 = pnand %p1158_p10, %p1366_p5  ;;  %s1398_s30 = int_to_ptr.vmem [resolvable:$true] %s123_s30 }
  0x14   : > { %s1401_s4 = scalar_lea.sflag [#allocation3], %s112_s23  ;;  %s1203_s5 = scalar_lea.hbm %s1390_s28, 2048 }
  0x15   : > { %p1204_p1 = scmp.ne.s32.totalorder %s1390_s28, %s1203_s5  ;;  %p1205_p2 = pneg %p1394_p13 }
  0x16   : > { %s1208_s8 = scalar_lea.hbm %s1652_s1, 4096  ;;  %p1209_p5 = scmp.lt.u32.totalorder %s1390_s28, %s1652_s1 }
  0x17   : > { %p1206_p3 = pnand %p1205_p2, %p1204_p1  ;;  %p1210_p7 = scmp.lt.u32.totalorder %s1208_s8, %s1203_s5 }
  0x18   : > { %p1212_p10 = scmp.lt.u32.totalorder %s1203_s5, %s1390_s28 }
  0x19   : > { %p1207_p4 = pneg %p1206_p3  ;;  %p1211_p8 = por %p1210_p7, %p1209_p5 }
  0x1b   : > { %p1213_p9 = por %p1212_p10, %p1211_p8 }
  0x1d   : > { %p1214_p0 = pnand %p1213_p9, %p1207_p4 }
  0x1f   : > { %1217 = shalt.err (!%p1214_p0)
}
  0x20   : > { %s1218_s17 = scalar_lea.vmem %s1398_s30, 2048  ;;  %s1301_s19 = smov [#allocation2]  }
  0x21   : > { %p1219_p1 = scmp.ne.s32.totalorder %s1398_s30, %s1218_s17  ;;  %s1223_s23 = sshll.u32 %s1301_s19, 4  ;;  %s1224_s23 = int_to_ptr.vmem [resolvable:$false] %s1223_s23 }
  0x22   : > { %s1225_s24 = scalar_lea.vmem %s1224_s23, 4096  ;;  %p1226_p11 = scmp.lt.s32.totalorder %s1398_s30, %s1224_s23 }
  0x23   : > { %p1221_p3 = pnand %p1219_p1, %p1205_p2  ;;  %p1227_p5 = scmp.lt.s32.totalorder %s1225_s24, %s1218_s17 }
  0x25   : > { %p1222_p12 = pneg %p1221_p3  ;;  %p1228_p7 = por %p1227_p5, %p1226_p11 }
  0x27   : > { %p1229_p8 = pnand %p1228_p7, %p1222_p12 }
  0x29   : > { %1232 = shalt.err (!%p1229_p8)
}
  0x2a   : > { %s1302_s25 = smov 1024   ;;  %s1303_s26 = smov 512  }
  0x2b   : > { %s1304_s27 = smov 32   ;;  %p131_p9 = scmp.lt.s32.totalorder %s1299_s12, 3 }
  0x2c   : > { %1153 = dma.hbm_to_vmem [thread:$0]  (!%p1394_p13), %s1390_s28, 2048, %s1398_s30, %s1401_s4, %s1302_s25, %s1303_s26, %s1304_s27  }
  0x2d   : > { %p1660_p0 = scmp.ge.s32.totalorder %s1299_s12, 1 }
  0x2f   : > { %p132_p2 = pnand %p1660_p0, %p131_p9 }
  0x30   : > { %s1433_s29 = sand.u32 (!%p132_p2), 1, %s1291_s10  }
  0x31   : > { %135 = sbr.rel (%p132_p2) target bundleno = 984 (0x3d8), region = 28  ;;  %s1059_s5 = sshll.u32 (!%p132_p2), %s1433_s29, 7 }
  0x32   : > { %s138_s6 = scalar_lea.sflag (!%p132_p2), [#allocation3], %s1433_s29  ;;  %s1439_s7 = scalar_lea.vmem (!%p132_p2), [#allocation2], %s1059_s5 }
  0x38   : > { %1278 = dma.done.wait (%p1370_p6), %s138_s6, 2048  }
  0x39   : > { %1280 = vsyncadd (%p1370_p6), %s138_s6, 4294965248  ;;  %v1305_v0 = vmov 0.0   ;;  %v1306_v1 = vmov 31   ;;  %vm204_vm0 = vcmask 1045504   ;;  %vm1307_vm1 = vmmov 1   ;;  %v165_v3 = vld [vmem:[%s1439_s7 + $0x8] sm:$0xff] }
  0x3a   : > { %281 = vmatprep.mubr.f32.mxu0 %v1305_v0  ;;  %358 = vmatprep.mubr.f32.mxu1 %v1305_v0  ;;  %vm1449_vm2 = vmpackc.low %vm204_vm0, %vm1307_vm1  ;;  %v169_v4 = vld [vmem:[%s1439_s7 + $0x28] sm:$0xff]  ;;  %v167_v5 = vld [vmem:[%s1439_s7 + $0x18] sm:$0xff]  ;;  %vm199_vm3 = vcmask 244736   ;;  %vm387_vm4 = vcmask 1046528   ;;  %vm384_vm6 = vcmask 121856   ;;  %vm552_vm7 = vcmask 48128  }
  0x3b   : > { %1201 = vset.pattern.permute.xlu0 %v1306_v1  ;;  %1202 = vset.pattern.permute.xlu1 %v1306_v1  ;;  %v1102_v6 = vpack.c.bf16 %v169_v4, %v165_v3  ;;  %v171_v7 = vld [vmem:[%s1439_s7 + $0x38] sm:$0xff]  ;;  %v164_v8 = vld [vmem:[%s1439_s7] sm:$0xff]  ;;  %v166_v12 = vld [vmem:[%s1439_s7 + $0x10] sm:$0xff]  ;;  %s1582_s28 = scalar_lea.vmem [#allocation5], %s1059_s5  ;;  %s1101_s5 = sshll.u32 %s1348_s13, 9 }
  0x3c   : > { %v168_v9 = vld [vmem:[%s1439_s7 + $0x20] sm:$0xff]  ;;  %v1112_v10 = vpack.c.bf16 %v171_v7, %v167_v5  ;;  %v170_v13 = vld [vmem:[%s1439_s7 + $0x30] sm:$0xff]  ;;  %v173_v14 = vld [vmem:[%s1439_s7 + $0x48] sm:$0xff]  ;;  %s979_s30 = sshll.u32 %s1582_s28, 4  ;;  %s1601_s13 = scalar_lea.hbm %s1653_s2, %s1101_s5  ;;  %s1603_s30 = int_to_ptr.vmem [resolvable:$true] %s979_s30 }
  0x3d   : > { %v1104_v11 = vpack.c.bf16 %v168_v9, %v164_v8  ;;  %1103 = vmatprep.subr.bf16.mxu0 %v1102_v6  ;;  %v1114_v15 = vpack.c.bf16 %v170_v13, %v166_v12  ;;  %v177_v16 = vld [vmem:[%s1439_s7 + $0x68] sm:$0x3f]  ;;  %v175_v17 = vld [vmem:[%s1439_s7 + $0x58] sm:$0xff]  ;;  %v172_v21 = vld [vmem:[%s1439_s7 + $0x40] sm:$0xff]  ;;  %s966_s8 = scalar_lea.sflag [#allocation4], %s1433_s29  ;;  %s1233_s14 = scalar_lea.vmem %s1603_s30, 2048 }
  0x3e   : > { %v179_v18 = vld [vmem:[%s1439_s7 + $0x78] sm:$0x3f]  ;;  %1113 = vmatprep.subr.bf16.mxu1 %v1112_v10  ;;  %v1106_v19 = vpack.c.bf16 %v177_v16, %v173_v14  ;;  %v176_v22 = vld [vmem:[%s1439_s7 + $0x60] sm:$0x3f]  ;;  %v174_v23 = vld [vmem:[%s1439_s7 + $0x50] sm:$0xff]  ;;  %p1234_p6 = scmp.ne.s32.totalorder %s1603_s30, %s1233_s14  ;;  %p1665_p11 = scmp.ne.s32.totalorder %s1657_s21, 0 }
  0x3f   : > { %1105 = vmatpush1.bf16.msra.mxu0 %v1104_v11  ;;  %v1116_v20 = vpack.c.bf16 %v179_v18, %v175_v17  ;;  %1115 = vmatpush1.bf16.msra.mxu1 %v1114_v15  ;;  %v1109_v24 = vpack.c.bf16 %v176_v22, %v172_v21  ;;  %v178_v25 = vld [vmem:[%s1439_s7 + $0x70] sm:$0x3f]  ;;  %v180_v27 = vld [vmem:[%s1651_s0] sm:$0xff]  ;;  %v181_v28 = vld [vmem:[%s1651_s0 + $0x8] sm:$0x7f]  ;;  %s1308_s16 = smov [#allocation5]  }
  0x40   : > { %1108 = vmatprep.subr.msk.bf16.mxu0 %vm1449_vm2, %v1106_v19  ;;  %v1119_v26 = vpack.c.bf16 %v178_v25, %v174_v23  ;;  %191 = vperm.xlu0 %1201, %v180_v27   ;;  %v1487_v29 = vld [vmem:[%s1651_s0 + $0x20] sm:$0x7f]  ;;  %v1494_v30 = vld [vmem:[%s1651_s0 + $0x30] sm:$0xff]  ;;  %v183_v33 = vld [vmem:[%s1651_s0 + $0x18] sm:$0xff]  ;;  %p1235_p12 = pnand %p1234_p6, %p1665_p11  ;;  %s1237_s17 = sshll.u32 %s1308_s16, 4  ;;  %s1238_s17 = int_to_ptr.vmem [resolvable:$false] %s1237_s17 }
  0x41   : > { %1118 = vmatprep.subr.msk.bf16.mxu1 %vm1449_vm2, %v1116_v20  ;;  %v1502_v31 = vld [vmem:[%s1651_s0 + $0x40] sm:$0x3f]  ;;  %v182_v32 = vld [vmem:[%s1651_s0 + $0x10] sm:$0x3f]  ;;  %v1514_v34 = vld [vmem:[%s1651_s0 + $0x28] sm:$0xff]  ;;  %s1239_s19 = scalar_lea.vmem %s1238_s17, 4096  ;;  %p1240_p4 = scmp.lt.s32.totalorder %s1603_s30, %s1238_s17 }
  0x42   : > { %381 = vperm.xlu1 %1202, %v182_v32   ;;  %v1520_v35 = vld [vmem:[%s1651_s0 + $0x38] sm:$0xff]  ;;  %vm1524_vm5 = vmpackc.low %vm387_vm4, %vm1307_vm1  ;;  %p1236_p13 = pneg %p1235_p12  ;;  %p1241_p10 = scmp.lt.s32.totalorder %s1239_s19, %s1233_s14 }
  0x43   : > { %1111 = vmatpush1.bf16.msk.msra.mxu0 %vm1449_vm2, %v1109_v24  ;;  %1121 = vmatpush1.bf16.msk.msra.mxu1 %vm1449_vm2, %v1119_v26 }
  0x44   : > { %196 = vperm.xlu0 %1201, %v181_v28   ;;  %p1242_p1 = por %p1241_p10, %p1240_p4 }
  0x46   : > { %1063 = vmatmul.mubr.msk.f32.vlgmr.msra.gmra.mrb[0].mxu0 %vm199_vm3, %v180_v27  ;;  %1067 = vmatmul.mubr.msk.f32.vlgmr.msra.gmra.mrb[0].mxu1 %vm199_vm3, %v180_v27  ;;  %p1243_p3 = pnand %p1242_p1, %p1236_p13 }
  0x47   : > { %287 = vmatprep.mubr.f32.mxu0 %v1305_v0  ;;  %364 = vmatprep.mubr.f32.mxu1 %v1305_v0 }
  0x48   : > { %549 = vperm.xlu0 %1201, %v1487_v29   ;;  %544 = vperm.xlu1 %1202, %v183_v33  }
  0x4a   : > { %1064 = vmatmul.mubr.msk.f32.gmra.mrb[2].mxu0 %vm199_vm3, %v181_v28  ;;  %1068 = vmatmul.mubr.msk.f32.gmra.mrb[2].mxu1 %vm199_vm3, %v181_v28 }
  0x4b   : > { %464 = vmatprep.mubr.f32.mxu0 %v1305_v0  ;;  %535 = vmatprep.mubr.f32.mxu1 %v1305_v0 }
  0x4c   : > { %738 = vperm.xlu0 %1201, %v1494_v30   ;;  %733 = vperm.xlu1 %1202, %v1514_v34  }
  0x50   : > { %748 = vperm.xlu0 %1201, %v1502_v31   ;;  %743 = vperm.xlu1 %1202, %v1520_v35  }
  0xbf   : > { %v192_v36 = vpop.permute.xlu0 %191 }
  0xc1   : > { %v382_v4 = vpop.permute.xlu1 %381 }
  0xc3   : > { %v197_v42 = vpop.permute.xlu0 %196 }
  0xc7   : > { %v545_v16 = vpop.permute.xlu1 %544  ;;  %v550_v19 = vpop.permute.xlu0 %549 }
 0x119   : > { %v283_v37 = vpop.f32.mrb[0].mxu0  ;;  %v360_v38 = vpop.f32.mrb[0].mxu1 }
 0x11a   : > { %v285_v39 = vpop.f32.mrb[1].mxu0  ;;  %v362_v40 = vpop.f32.mrb[1].mxu1  ;;  %v284_v41 = vadd.f32 %v283_v37, %v192_v36  ;;  %v361_v43 = vadd.f32 %v360_v38, %v192_v36 }
 0x11b   : > { %v286_v44 = vadd.f32 %v285_v39, %v192_v36  ;;  %v363_v46 = vadd.f32 %v362_v40, %v192_v36 }
 0x11c   : > { %v371_v53 = vmax.f32 %v284_v41, 0.0  ;;  %v373_v56 = vmax.f32 %v361_v43, 0.0 }
 0x11d   : > { %v289_v45 = vpop.f32.mrb[2].mxu0  ;;  %v366_v48 = vpop.f32.mrb[2].mxu1  ;;  %v372_v57 = vmax.f32 %v286_v44, 0.0  ;;  %v374_v61 = vmax.f32 %v363_v46, 0.0 }
 0x11e   : > { %v290_v47 = vadd.f32 %v289_v45, %v197_v42  ;;  %v291_v49 = vpop.f32.mrb[3].mxu0  ;;  %v367_v50 = vadd.f32 %v366_v48, %v197_v42  ;;  %v368_v52 = vpop.f32.mrb[3].mxu1 }
 0x11f   : > { %v292_v51 = vadd.f32 %v291_v49, %v197_v42  ;;  %v369_v55 = vadd.f32 %v368_v52, %v197_v42 }
 0x120   : > { %v375_v54 = vmax.f32 %v290_v47, 0.0  ;;  %v377_v58 = vmax.f32 %v367_v50, 0.0 }
 0x121   : > { %v376_v59 = vmax.f32 %v292_v51, 0.0  ;;  %v378_v63 = vmax.f32 %v369_v55, 0.0 }
 0x122   : > { %v1125_v62 = vpack.c.bf16 %v375_v54, %v371_v53  ;;  %v1131_v1 = vpack.c.bf16 %v377_v58, %v373_v56 }
 0x123   : > { %v1122_v2 = vpack.c.bf16 %v376_v59, %v372_v57  ;;  %v1128_v3 = vpack.c.bf16 %v378_v63, %v374_v61 }
 0x125   : > { %1124 = vmatprep.subr.msk.bf16.mxu0 %vm1524_vm5, %v1122_v2  ;;  %1130 = vmatprep.subr.msk.bf16.mxu1 %vm1524_vm5, %v1128_v3 }
 0x126   : > { %1127 = vmatpush1.bf16.msk.msra.mxu0 %vm1524_vm5, %v1125_v62  ;;  %1133 = vmatpush1.bf16.msk.msra.mxu1 %vm1524_vm5, %v1131_v1 }
 0x129   : > { %1071 = vmatmul.mubr.msk.f32.vlgmr.msra.gmra.mrb[4].mxu0 %vm384_vm6, %v182_v32  ;;  %1074 = vmatmul.mubr.msk.f32.vlgmr.msra.gmra.mrb[4].mxu1 %vm384_vm6, %v182_v32 }
 0x12a   : > { %633 = vmatprep.mubr.f32.mxu0 %v1305_v0  ;;  %710 = vmatprep.mubr.f32.mxu1 %v1305_v0 }
 0x1fc   : > { %v466_v5 = vpop.f32.mrb[4].mxu0  ;;  %v537_v6 = vpop.f32.mrb[4].mxu1 }
 0x1fd   : > { %v468_v7 = vpop.f32.mrb[5].mxu0  ;;  %v539_v9 = vpop.f32.mrb[5].mxu1  ;;  %v467_v10 = vadd.f32 %v466_v5, %v382_v4  ;;  %v538_v12 = vadd.f32 %v537_v6, %v382_v4 }
 0x1fe   : > { %v469_v8 = vadd.f32 %v468_v7, %v382_v4  ;;  %v540_v11 = vadd.f32 %v539_v9, %v382_v4 }
 0x200   : > { %1075 = vmatprep.subr.msk.mxu0 %vm204_vm0, %v469_v8  ;;  %1079 = vmatprep.subr.msk.mxu1 %vm204_vm0, %v540_v11 }
 0x201   : > { %1076 = vmatpush1.msk.msra.mxu0 %vm204_vm0, %v467_v10  ;;  %1080 = vmatpush1.msk.msra.mxu1 %vm204_vm0, %v538_v12 }
 0x202   : > { %1077 = vmatmul.mubr.msk.f32.vlgmr.msra.gmra.mrb[6].mxu0 %vm552_vm7, %v183_v33  ;;  %1081 = vmatmul.mubr.msk.f32.vlgmr.msra.gmra.mrb[6].mxu1 %vm552_vm7, %v183_v33 }
 0x203   : > { %639 = vmatprep.mubr.f32.mxu0 %v1305_v0  ;;  %716 = vmatprep.mubr.f32.mxu1 %v1305_v0 }
 0x206   : > { %1078 = vmatmul.mubr.msk.f32.gmra.mrb[8].mxu0 %vm552_vm7, %v1487_v29  ;;  %1082 = vmatmul.mubr.msk.f32.gmra.mrb[8].mxu1 %vm552_vm7, %v1487_v29 }
 0x207   : > { %835 = vmatprep.mubr.f32.mxu0 %v1305_v0  ;;  %924 = vmatprep.mubr.f32.mxu1 %v1305_v0 }
 0x2d5   : > { %v635_v13 = vpop.f32.mrb[6].mxu0  ;;  %v712_v14 = vpop.f32.mrb[6].mxu1 }
 0x2d6   : > { %v637_v15 = vpop.f32.mrb[7].mxu0  ;;  %v714_v17 = vpop.f32.mrb[7].mxu1  ;;  %v636_v18 = vadd.f32 %v635_v13, %v545_v16  ;;  %v713_v20 = vadd.f32 %v712_v14, %v545_v16 }
 0x2d7   : > { %v638_v21 = vadd.f32 %v637_v15, %v545_v16  ;;  %v715_v23 = vadd.f32 %v714_v17, %v545_v16 }
 0x2d8   : > { %v723_v32 = vmax.f32 %v636_v18, 0.0  ;;  %v725_v37 = vmax.f32 %v713_v20, 0.0 }
 0x2d9   : > { %v641_v22 = vpop.f32.mrb[8].mxu0  ;;  %v718_v25 = vpop.f32.mrb[8].mxu1  ;;  %v724_v38 = vmax.f32 %v638_v21, 0.0  ;;  %v726_v41 = vmax.f32 %v715_v23, 0.0 }
 0x2da   : > { %v642_v24 = vadd.f32 %v641_v22, %v550_v19  ;;  %v643_v26 = vpop.f32.mrb[9].mxu0  ;;  %v719_v27 = vadd.f32 %v718_v25, %v550_v19  ;;  %v720_v29 = vpop.f32.mrb[9].mxu1 }
 0x2db   : > { %v644_v28 = vadd.f32 %v643_v26, %v550_v19  ;;  %v721_v36 = vadd.f32 %v720_v29, %v550_v19 }
 0x2dc   : > { %v727_v33 = vmax.f32 %v642_v24, 0.0  ;;  %v729_v39 = vmax.f32 %v719_v27, 0.0 }
 0x2dd   : > { %v728_v40 = vmax.f32 %v644_v28, 0.0  ;;  %v730_v43 = vmax.f32 %v721_v36, 0.0 }
 0x2de   : > { %v1137_v42 = vpack.c.bf16 %v727_v33, %v723_v32  ;;  %v1143_v44 = vpack.c.bf16 %v729_v39, %v725_v37 }
 0x2df   : > { %v1134_v45 = vpack.c.bf16 %v728_v40, %v724_v38  ;;  %v1140_v46 = vpack.c.bf16 %v730_v43, %v726_v41 }
 0x2e1   : > { %1136 = vmatprep.subr.msk.bf16.mxu0 %vm1524_vm5, %v1134_v45  ;;  %1142 = vmatprep.subr.msk.bf16.mxu1 %vm1524_vm5, %v1140_v46 }
 0x2e2   : > { %1139 = vmatpush1.bf16.msk.msra.mxu0 %vm1524_vm5, %v1137_v42  ;;  %1145 = vmatpush1.bf16.msk.msra.mxu1 %vm1524_vm5, %v1143_v44 }
 0x2e5   : > { %1085 = vmatmul.mubr.msk.f32.vlgmr.msra.gmra.mrb[10].mxu0 %vm384_vm6, %v1514_v34  ;;  %1091 = vmatmul.mubr.msk.f32.vlgmr.msra.gmra.mrb[10].mxu1 %vm384_vm6, %v1514_v34 }
 0x2e6   : > { %841 = vmatprep.mubr.f32.mxu0 %v1305_v0  ;;  %930 = vmatprep.mubr.f32.mxu1 %v1305_v0 }
 0x2e9   : > { %1086 = vmatmul.mubr.msk.f32.gmra.mrb[12].mxu0 %vm384_vm6, %v1494_v30  ;;  %1092 = vmatmul.mubr.msk.f32.gmra.mrb[12].mxu1 %vm384_vm6, %v1494_v30  ;;  %v734_v30 = vpop.permute.xlu1 %733 }
 0x2ea   : > { %847 = vmatprep.mubr.f32.mxu0 %v1305_v0  ;;  %936 = vmatprep.mubr.f32.mxu1 %v1305_v0 }
 0x2ed   : > { %1087 = vmatmul.mubr.msk.f32.gmra.mrb[14].mxu0 %vm384_vm6, %v1520_v35  ;;  %1093 = vmatmul.mubr.msk.f32.gmra.mrb[14].mxu1 %vm384_vm6, %v1520_v35  ;;  %v744_v60 = vpop.permute.xlu1 %743 }
 0x2ee   : > { %853 = vmatprep.mubr.f32.mxu0 %v1305_v0  ;;  %942 = vmatprep.mubr.f32.mxu1 %v1305_v0 }
 0x2f1   : > { %1088 = vmatmul.mubr.msk.f32.gmra.mrb[16].mxu0 %vm384_vm6, %v1502_v31  ;;  %1094 = vmatmul.mubr.msk.f32.gmra.mrb[16].mxu1 %vm384_vm6, %v1502_v31  ;;  %v739_v31 = vpop.permute.xlu0 %738 }
 0x2f5   : > { %v749_v6 = vpop.permute.xlu0 %748 }
 0x3b8   : > { %v837_v34 = vpop.f32.mrb[10].mxu0  ;;  %v926_v48 = vpop.f32.mrb[10].mxu1 }
 0x3b9   : > { %v838_v47 = vadd.f32 %v837_v34, %v734_v30  ;;  %v839_v49 = vpop.f32.mrb[11].mxu0  ;;  %v927_v50 = vadd.f32 %v926_v48, %v734_v30  ;;  %v928_v52 = vpop.f32.mrb[11].mxu1 }
 0x3ba   : > { %v840_v51 = vadd.f32 %v839_v49, %v734_v30  ;;  %v929_v0 = vadd.f32 %v928_v52, %v734_v30 }
 0x3bb   : > { %949 = vst [vmem:[%s1582_s28] sm:$0xff] %v838_v47  ;;  %951 = vst [vmem:[%s1582_s28 + $0x10] sm:$0xff] %v927_v50 }
 0x3bc   : > { %950 = vst [vmem:[%s1582_s28 + $0x8] sm:$0xff] %v840_v51  ;;  %v843_v35 = vpop.f32.mrb[12].mxu0  ;;  %952 = vst [vmem:[%s1582_s28 + $0x18] sm:$0xff] %v929_v0  ;;  %v932_v54 = vpop.f32.mrb[12].mxu1 }
 0x3bd   : > { %v844_v53 = vadd.f32 %v843_v35, %v739_v31  ;;  %v845_v55 = vpop.f32.mrb[13].mxu0  ;;  %v933_v56 = vadd.f32 %v932_v54, %v739_v31  ;;  %v934_v58 = vpop.f32.mrb[13].mxu1 }
 0x3be   : > { %v846_v57 = vadd.f32 %v845_v55, %v739_v31  ;;  %v935_v59 = vadd.f32 %v934_v58, %v739_v31 }
 0x3bf   : > { %953 = vst [vmem:[%s1582_s28 + $0x20] sm:$0xff] %v844_v53  ;;  %955 = vst [vmem:[%s1582_s28 + $0x30] sm:$0xff] %v933_v56 }
 0x3c0   : > { %954 = vst [vmem:[%s1582_s28 + $0x28] sm:$0xff] %v846_v57  ;;  %v849_v61 = vpop.f32.mrb[14].mxu0  ;;  %956 = vst [vmem:[%s1582_s28 + $0x38] sm:$0xff] %v935_v59  ;;  %v938_v63 = vpop.f32.mrb[14].mxu1 }
 0x3c1   : > { %v850_v62 = vadd.f32 %v849_v61, %v744_v60  ;;  %v851_v1 = vpop.f32.mrb[15].mxu0  ;;  %v939_v2 = vadd.f32 %v938_v63, %v744_v60  ;;  %v940_v4 = vpop.f32.mrb[15].mxu1 }
 0x3c2   : > { %v852_v3 = vadd.f32 %v851_v1, %v744_v60  ;;  %v941_v5 = vadd.f32 %v940_v4, %v744_v60 }
 0x3c3   : > { %957 = vst [vmem:[%s1582_s28 + $0x40] sm:$0xff] %v850_v62  ;;  %959 = vst [vmem:[%s1582_s28 + $0x50] sm:$0xff] %v939_v2 }
 0x3c4   : > { %958 = vst [vmem:[%s1582_s28 + $0x48] sm:$0xff] %v852_v3  ;;  %v855_v7 = vpop.f32.mrb[16].mxu0  ;;  %960 = vst [vmem:[%s1582_s28 + $0x58] sm:$0xff] %v941_v5  ;;  %v944_v9 = vpop.f32.mrb[16].mxu1 }
 0x3c5   : > { %v856_v8 = vadd.f32 %v855_v7, %v749_v6  ;;  %v857_v10 = vpop.f32.mrb[17].mxu0  ;;  %v945_v11 = vadd.f32 %v944_v9, %v749_v6  ;;  %v946_v13 = vpop.f32.mrb[17].mxu1 }
 0x3c6   : > { %v858_v12 = vadd.f32 %v857_v10, %v749_v6  ;;  %v947_v14 = vadd.f32 %v946_v13, %v749_v6 }
 0x3c7   : > { %961 = vst [vmem:[%s1582_s28 + $0x60] sm:$0x3f] %v856_v8  ;;  %963 = vst [vmem:[%s1582_s28 + $0x70] sm:$0x3f] %v945_v11 }
 0x3c8   : > { %962 = vst [vmem:[%s1582_s28 + $0x68] sm:$0x3f] %v858_v12  ;;  %964 = vst [vmem:[%s1582_s28 + $0x78] sm:$0x3f] %v947_v14 }
 0x3c9   : > { %1246 = shalt.err (!%p1243_p3)
}
 0x3ca   : > { %s1247_s23 = scalar_lea.hbm %s1601_s13, 2048  ;;  %s1251_s26 = scalar_lea.hbm %s1653_s2, 4096 }
 0x3cb   : > { %p1248_p5 = scmp.ne.s32.totalorder %s1601_s13, %s1247_s23  ;;  %p1252_p9 = scmp.lt.u32.totalorder %s1601_s13, %s1653_s2 }
 0x3cc   : > { %p1253_p0 = scmp.lt.u32.totalorder %s1251_s26, %s1247_s23  ;;  %p1255_p6 = scmp.lt.u32.totalorder %s1247_s23, %s1601_s13 }
 0x3cd   : > { %p1249_p7 = pnand %p1248_p5, %p1665_p11 }
 0x3ce   : > { %p1254_p2 = por %p1253_p0, %p1252_p9 }
 0x3cf   : > { %p1250_p8 = pneg %p1249_p7 }
 0x3d0   : > { %p1256_p12 = por %p1255_p6, %p1254_p2 }
 0x3d2   : > { %p1257_p13 = pnand %p1256_p12, %p1250_p8 }
 0x3d4   : > { %1260 = shalt.err (!%p1257_p13)
}
 0x3d5   : > { %s1309_s7 = smov 512   ;;  %s1310_s20 = smov 1024  }
 0x3d6   : > { %s1311_s28 = smov 32  }
 0x3d7   : > { %1148 = dma.vmem_to_hbm [thread:$0]  (%p1665_p11), %s1603_s30, 2048, %s1601_s13, %s966_s8, %s1309_s7, %s1310_s20, %s1311_s28  }
 0x3d8 PF: > { %s994_s5 = sand.u32 1, %s1287_s9   ;;  %p1666_p4 = scmp.ne.s32.totalorder %s1658_s22, 0 }
 0x3d9   : > { %p1667_p10 = scmp.ge.s32.totalorder %s1299_s12, 2  ;;  %s995_s3 = scalar_lea.sflag [#allocation4], %s994_s5 }
 0x3db   : > { %p1155_p1 = pnand %p1667_p10, %p1666_p4 }
 0x3dd   : > { %1282 = dma.done.wait (!%p1155_p1), %s995_s3, 2048  }
 0x3de   : > { %1284 = vsyncadd (!%p1155_p1), %s995_s3, 4294965248  ;;  %p15_p3 = scmp.ge.s32.totalorder %s1352_s15, 4   ;;  %s1668_s9 = smov %s1291_s10 }
 0x3df   : > { %s1669_s10 = smov %s1295_s11  ;;  %s1670_s11 = smov %s1364_s18 }
 0x3e0   : > { %s1671_s12 = smov %s1352_s15  ;;  %17 = sbr.rel (!%p15_p3) target bundleno = 5 (0x5), region = 73 }
 0x3e7   :  { %1000 = vsyncpa [#allocation3], 1 }
 0x3e8   :  { %1002 = vsyncpa [#allocation3 + $0x1], 1 }
 0x3e9   :  { %1003 = vsyncpa [#allocation4], 1 }
 0x3ea   :  { %1005 = vsyncpa [#allocation4 + $0x1], 1 }

</bundles_post_ra>
